<compile_context>
chip_gen: v6e
topology: v6e:2x2x1
jax: 0.10.0
libtpu: 0.0.40
codegen_flags: <defaults>
</compile_context>

<pallas_src>
import jax
import jax.numpy as jnp
from jax.experimental import pallas as pl
from jax.experimental.pallas import tpu as pltpu


def _add_consts_kernel(x_ref, o1_ref, o2_ref):
    x = x_ref[...]
    o1_ref[...] = x + jnp.asarray(1, x.dtype)
    o2_ref[...] = x + jnp.asarray(2, x.dtype)


# Whole-array-in-VMEM fast-path threshold (bytes of the input).
_SMALL_BYTES = 512 * 1024


def _round_up(v, m):
    return -(-v // m) * m


def _tuning():
    """(block_bytes, vmem_limit_bytes) tuned by TPU generation (VMEM size)."""
    vmem_cap = None
    try:
        vmem_cap = getattr(pltpu.get_tpu_info(), "vmem_capacity_bytes", None)
    except Exception:
        vmem_cap = None
    if vmem_cap is not None and vmem_cap >= 100 * 1024 * 1024:
        # v5e / v6e: 128 MiB physical VMEM -> larger blocks, raised scoped limit
        # (6 live double-buffered blocks x 4 MiB = 24 MiB, well under 64 MiB).
        return 4 * 1024 * 1024, 64 * 1024 * 1024
    # v7x (64 MiB physical VMEM) or unknown chip: conservative 2 MiB blocks.
    return 2 * 1024 * 1024, 32 * 1024 * 1024


def multi_output_add(x):
    """Returns (x + 1, x + 2), computed in a single Pallas kernel."""
    orig_shape = x.shape
    dtype = x.dtype
    total = x.size
    itemsize = jnp.dtype(dtype).itemsize
    # Native sublane multiple: 8 for 4-byte, 16 for 2-byte, 32 for 1-byte dtypes.
    sub = max(8, 32 // itemsize)

    whole_in_specs = [pl.BlockSpec(memory_space=pltpu.MemorySpace.VMEM)]
    whole_out_specs = (
        pl.BlockSpec(memory_space=pltpu.MemorySpace.VMEM),
        pl.BlockSpec(memory_space=pltpu.MemorySpace.VMEM),
    )

    # ------------------------------------------------------------------
    # Pick a lane width in {1024, 512, 256, 128} that exactly divides the
    # element count: contiguous reshape only, never any pad / slice copy.
    # Prefer one whose row count is sublane-aligned for this dtype.
    # ------------------------------------------------------------------
    lanes = None
    for cand in (1024, 512, 256, 128):
        if total % cand == 0 and (total // cand) % sub == 0:
            lanes = cand
            break
    if lanes is None:
        for cand in (1024, 512, 256, 128):
            if total % cand == 0:
                lanes = cand
                break

    if lanes is not None:
        rows = total // lanes
        x2d = x.reshape(rows, lanes)                   # contiguous: no copy
        out_sds = jax.ShapeDtypeStruct((rows, lanes), dtype)

        # Fast path: tiny arrays -> single no-grid call, whole array in VMEM.
        if total * itemsize <= _SMALL_BYTES:
            o1, o2 = pl.pallas_call(
                _add_consts_kernel,
                out_shape=(out_sds, out_sds),
                in_specs=whole_in_specs,
                out_specs=whole_out_specs,
            )(x2d)
            return o1.reshape(orig_shape), o2.reshape(orig_shape)

        # Streaming path: lane-dense (block_rows, lanes) tiles over a 1-D
        # "parallel" row grid.  The ragged last block is masked by Pallas.
        block_bytes, vmem_limit = _tuning()
        block_rows = max(sub, min(block_bytes // (lanes * itemsize), rows))
        block_rows = max(sub, (block_rows // sub) * sub)
        grid_len = pl.cdiv(rows, block_rows)
        if grid_len % 2 == 1:
            # Aim for an even (>=2) number of blocks so v7x's two TensorCores
            # split the parallel axis evenly (harmless on v5e/v6e).
            target = 2 if grid_len < 2 else grid_len + 1
            br = _round_up(-(-rows // target), sub)
            block_rows = max(sub, min(br, block_rows))
            grid_len = pl.cdiv(rows, block_rows)

        tile_spec = pl.BlockSpec((block_rows, lanes), lambda i: (i, 0))
        o1, o2 = pl.pallas_call(
            _add_consts_kernel,
            out_shape=(out_sds, out_sds),
            grid=(grid_len,),
            in_specs=[tile_spec],
            out_specs=(tile_spec, tile_spec),
            compiler_params=pltpu.CompilerParams(
                dimension_semantics=("parallel",),
                vmem_limit_bytes=vmem_limit,
            ),
        )(x2d)
        return o1.reshape(orig_shape), o2.reshape(orig_shape)

    # ------------------------------------------------------------------
    # Fallback (element count not divisible by 128): keep the original
    # trailing dim as the (full) lane axis and block over leading rows.
    # Still no pad / slice; edge blocks are masked.  Rare for NCHW inputs.
    # ------------------------------------------------------------------
    last = int(orig_shape[-1]) if len(orig_shape) >= 1 else 1
    last = max(last, 1)
    lead = total // last
    x2d = x.reshape(lead, last)
    out_sds = jax.ShapeDtypeStruct((lead, last), dtype)
    block_bytes, vmem_limit = _tuning()
    row_budget = max(sub, block_bytes // max(1, last * itemsize))

    if total * itemsize <= _SMALL_BYTES or row_budget >= lead:
        o1, o2 = pl.pallas_call(
            _add_consts_kernel,
            out_shape=(out_sds, out_sds),
            in_specs=whole_in_specs,
            out_specs=whole_out_specs,
            compiler_params=pltpu.CompilerParams(vmem_limit_bytes=vmem_limit),
        )(x2d)
        return o1.reshape(orig_shape), o2.reshape(orig_shape)

    block_rows = max(sub, (row_budget // sub) * sub)
    tile_spec = pl.BlockSpec((block_rows, last), lambda i: (i, 0))
    o1, o2 = pl.pallas_call(
        _add_consts_kernel,
        out_shape=(out_sds, out_sds),
        grid=(pl.cdiv(lead, block_rows),),
        in_specs=[tile_spec],
        out_specs=(tile_spec, tile_spec),
        compiler_params=pltpu.CompilerParams(
            dimension_semantics=("parallel",),
            vmem_limit_bytes=vmem_limit,
        ),
    )(x2d)
    return o1.reshape(orig_shape), o2.reshape(orig_shape)


if __name__ == "__main__":
    key = jax.random.PRNGKey(0)
    # NCHW input consistent with the module: batch=2, channels=4, 16x16
    x = jax.random.normal(key, (2, 4, 16, 16), dtype=jnp.float32)

    y1, y2 = multi_output_add(x)
    jax.block_until_ready((y1, y2))

    assert y1.shape == x.shape and y2.shape == x.shape
    assert y1.dtype == x.dtype and y2.dtype == x.dtype
    assert jnp.allclose(y1, x + 1)
    assert jnp.allclose(y2, x + 2)

    print("KERNEL_OK")
</pallas_src>

<mosaic_0001>
module attributes {stable_mosaic.version = 11 : i64} {
  func.func @_add_consts_kernel(%arg0: memref<8x256xf32, #tpu.memory_space<vmem>>, %arg1: memref<8x256xf32, #tpu.memory_space<vmem>>, %arg2: memref<8x256xf32, #tpu.memory_space<vmem>>) attributes {dimension_semantics = [], scalar_prefetch = 0 : i64, scratch_operands = 0 : i64, tpu.core_type = #tpu.core_type<tc>} {
    %c0 = arith.constant 0 : index
    %c0_0 = arith.constant 0 : index
    %0 = vector.load %arg0[%c0, %c0_0] : memref<8x256xf32, #tpu.memory_space<vmem>>, vector<8x256xf32>
    %cst = arith.constant 1.000000e+00 : f32
    %1 = vector.broadcast %cst : f32 to vector<8x256xf32>
    %2 = arith.addf %0, %1 : vector<8x256xf32>
    %c0_1 = arith.constant 0 : index
    %c0_2 = arith.constant 0 : index
    %3 = vector.load %arg1[%c0_1, %c0_2] : memref<8x256xf32, #tpu.memory_space<vmem>>, vector<8x256xf32>
    tpu.vector_store %arg1[%c0_1, %c0_2], %2 {strides = array<i32>} : memref<8x256xf32, #tpu.memory_space<vmem>>, vector<8x256xf32>,
    %cst_3 = arith.constant 2.000000e+00 : f32
    %4 = vector.broadcast %cst_3 : f32 to vector<8x256xf32>
    %5 = arith.addf %0, %4 : vector<8x256xf32>
    %c0_4 = arith.constant 0 : index
    %c0_5 = arith.constant 0 : index
    %6 = vector.load %arg2[%c0_4, %c0_5] : memref<8x256xf32, #tpu.memory_space<vmem>>, vector<8x256xf32>
    tpu.vector_store %arg2[%c0_4, %c0_5], %5 {strides = array<i32>} : memref<8x256xf32, #tpu.memory_space<vmem>>, vector<8x256xf32>,
    return
  }
}

</mosaic_0001>

<bundles_post_ra>
// kernel: tpu_custom_call.1
= control target key start
LH: loop header
LB: loop body
LE: loop exit
PB: predicated region body
PF: predicated region fallthrough
CT: control target
= control target key end

     0   :  { %8 = vsyncpa [#allocation3], 0  ;;  %s159_s0 = inlined_call_operand.hbm [shape: f32[8,256], index: 0, kind: input, shape index: {}]   ;;  %s160_s1 = inlined_call_operand.hbm [shape: f32[8,256], index: 1, kind: output, shape index: {0}]   ;;  %s161_s2 = inlined_call_operand.hbm [shape: f32[8,256], index: 2, kind: output, shape index: {1}]  }
   0x1   :  { %9 = vsyncpa [#allocation4], 0 }
   0x2   :  { %10 = vsyncpa [#allocation7], 0  ;;  %s132_s9 = smov [#allocation2]  }
   0x3   :  { %s17_s10 = sshll.u32 %s132_s9, 4  ;;  %s18_s10 = int_to_ptr.vmem [resolvable:$true] %s17_s10 }
   0x4   :  { %s74_s11 = scalar_lea.vmem %s18_s10, 256  ;;  %p79_p1 = scmp.lt.s32.totalorder %s18_s10, %s18_s10 }
   0x5   :  { %p75_p0 = scmp.ne.s32.totalorder %s18_s10, %s74_s11  ;;  %p80_p2 = scmp.lt.s32.totalorder %s74_s11, %s74_s11 }
   0x7   :  { %p81_p3 = por %p80_p2, %p79_p1 }
   0x9   :  { %p82_p4 = pnand %p81_p3, %p75_p0 }
   0xb   :  { %85 = shalt.err (!%p82_p4)
}
   0xc   :  { %20 = dma.hbm_to_vmem [thread:$0]  %s159_s0, 256, %s18_s10, [#allocation3]  }
   0xd   :  { %126 = dma.done.wait [#allocation3], 256  }
   0xe   :  { %127 = vsyncadd [#allocation3], 4294967040  ;;  %s133_s14 = smov [#allocation5]   ;;  %s134_s16 = smov [#allocation6]   ;;  %v24_v0 = vld [vmem:[#allocation2] sm:$0xff]  ;;  %v25_v1 = vld [vmem:[#allocation2 + $0x8] sm:$0xff] }
   0xf   :  { %s40_s15 = sshll.u32 %s133_s14, 4  ;;  %s50_s17 = sshll.u32 %s134_s16, 4  ;;  %v26_v2 = vadd.f32 1.0, %v24_v0  ;;  %v27_v3 = vadd.f32 1.0, %v25_v1  ;;  %v30_v4 = vadd.f32 2.0, %v24_v0  ;;  %v31_v5 = vadd.f32 2.0, %v25_v1  ;;  %s41_s15 = int_to_ptr.vmem [resolvable:$true] %s40_s15  ;;  %s51_s17 = int_to_ptr.vmem [resolvable:$true] %s50_s17 }
  0x10   :  { %s86_s18 = scalar_lea.vmem %s41_s15, 256  ;;  %p91_p6 = scmp.lt.s32.totalorder %s41_s15, %s41_s15 }
  0x11   :  { %28 = vst [vmem:[#allocation5] sm:$0xff] %v26_v2  ;;  %29 = vst [vmem:[#allocation5 + $0x8] sm:$0xff] %v27_v3  ;;  %p87_p5 = scmp.ne.s32.totalorder %s41_s15, %s86_s18  ;;  %p92_p7 = scmp.lt.s32.totalorder %s86_s18, %s86_s18 }
  0x12   :  { %32 = vst [vmem:[#allocation6] sm:$0xff] %v30_v4  ;;  %33 = vst [vmem:[#allocation6 + $0x8] sm:$0xff] %v31_v5 }
  0x13   :  { %p93_p8 = por %p92_p7, %p91_p6 }
  0x15   :  { %p94_p9 = pnand %p93_p8, %p87_p5 }
  0x17   :  { %97 = shalt.err (!%p94_p9)
}
  0x18   :  { %43 = dma.vmem_to_hbm [thread:$0]  %s41_s15, 256, %s160_s1, [#allocation4]  }
  0x19   :  { %s106_s20 = scalar_lea.vmem %s51_s17, 256  ;;  %p111_p11 = scmp.lt.s32.totalorder %s51_s17, %s51_s17 }
  0x1a   :  { %p107_p10 = scmp.ne.s32.totalorder %s51_s17, %s106_s20  ;;  %p112_p12 = scmp.lt.s32.totalorder %s106_s20, %s106_s20 }
  0x1c   :  { %p113_p13 = por %p112_p12, %p111_p11 }
  0x1e   :  { %p114_p0 = pnand %p113_p13, %p107_p10 }
  0x20   :  { %117 = shalt.err (!%p114_p0)
}
  0x21   :  { %53 = dma.vmem_to_hbm [thread:$0]  %s51_s17, 256, %s161_s2, [#allocation7]  }
  0x22   :  { %128 = dma.done.wait [#allocation4], 256  }
  0x23   :  { %129 = vsyncadd [#allocation4], 4294967040 }
  0x24   :  { %130 = dma.done.wait [#allocation7], 256  }
  0x25   :  { %131 = vsyncadd [#allocation7], 4294967040 }
  0x26   :  { %60 = vsyncpa [#allocation3], 1 }
  0x27   :  { %61 = vsyncpa [#allocation4], 1 }
  0x28   :  { %62 = vsyncpa [#allocation7], 1 }

</bundles_post_ra>
